<compile_context>
chip_gen: v7x
topology: tpu7x:2x2x1
jax: 0.10.0
libtpu: 0.0.40
codegen_flags: <defaults>
</compile_context>

<pallas_src>
import functools

import jax
import jax.numpy as jnp
from jax.experimental import pallas as pl
from jax.experimental.pallas import tpu as pltpu

ALPHA = 0.25
GAMMA = 2.0
EPS = 1e-8


def _focal_loss_kernel(logits_ref, targets_ref, partial_ref, *, n_total, alpha, gamma):
    # logits_ref:  (tile_n, C) in VMEM (any float dtype; upcast in-register)
    # targets_ref: (tile_n, 1) int32 in VMEM
    # partial_ref: (8, 128) f32 in VMEM; element [0,0] holds this tile's sum.
    i = pl.program_id(0)

    x = logits_ref[...].astype(jnp.float32)          # (tn, C)
    t = targets_ref[...]                             # (tn, 1) int32
    tn, c = x.shape

    # Rows past the true batch size (ragged last tile). Per-row math never
    # mixes rows, so masking only the final per-row loss is sufficient —
    # jnp.where drops any NaN/Inf coming from stale padded rows.
    row_ids = i * tn + jax.lax.broadcasted_iota(jnp.int32, (tn, 1), 0)
    valid = row_ids < n_total                        # (tn, 1) bool

    # Stable softmax pieces, per row.
    m = jnp.max(x, axis=1, keepdims=True)                        # (tn, 1)
    sum_e = jnp.sum(jnp.exp(x - m), axis=1, keepdims=True)       # (tn, 1)

    # Target-class logit selected without a gather (at most one match/row).
    cls_ids = jax.lax.broadcasted_iota(jnp.int32, (tn, c), 1)
    x_t = jnp.sum(jnp.where(cls_ids == t, x, 0.0), axis=1, keepdims=True)

    # p_t directly (skips the log(sum_e) EUP op of the log-softmax route).
    p_t = jnp.exp(x_t - m) * pl.reciprocal(sum_e, approx=False)  # (tn, 1)
    one_minus = 1.0 - p_t
    if gamma == 2.0:
        focal_w = one_minus * one_minus           # VPU square, no exp/log pair
    else:
        focal_w = one_minus ** gamma              # generic (EUP pow) fallback
    # Reference semantics: log(p_t + 1e-8) clamp, applied to the true p_t.
    loss = -alpha * focal_w * jnp.log(p_t + EPS)
    loss = jnp.where(valid, loss, 0.0)

    tile_sum = jnp.sum(loss)
    # Lane-dense (8,128) slab per tile; only [0,0] carries the sum so the
    # wrapper can reduce with a single jnp.sum over all slabs.
    slab_r = jax.lax.broadcasted_iota(jnp.int32, (8, 128), 0)
    slab_c = jax.lax.broadcasted_iota(jnp.int32, (8, 128), 1)
    partial_ref[...] = jnp.where((slab_r == 0) & (slab_c == 0), tile_sum, 0.0)


def _vmem_capacity_bytes():
    try:
        return int(pltpu.get_tpu_info().vmem_capacity_bytes)
    except Exception:
        return 64 * 1024 * 1024  # conservative fallback (v7x per-TC VMEM)


def _round_up(x, m):
    return ((x + m - 1) // m) * m


def _pick_tile_rows(n, c, logits_itemsize, vmem_budget_bytes, max_tile_rows=None):
    """Rows per tile, sized by double-buffered VMEM bytes (lane padding incl.)."""
    # VMEM footprint per row: logits block lane-padded to a multiple of 128,
    # plus the (tile_n, 1) int32 targets block padded to 128 lanes (512 B/row).
    logits_row_bytes = _round_up(c, 128) * logits_itemsize
    targets_row_bytes = 128 * 4
    row_bytes = 2 * (logits_row_bytes + targets_row_bytes)   # x2: double buffer

    rows = max(8, (vmem_budget_bytes // row_bytes) // 8 * 8)
    if max_tile_rows is not None:
        rows = min(rows, max(8, (int(max_tile_rows) // 8) * 8))

    if n <= 8:
        return n                  # single tiny tile; block dim == full array dim
    if n <= rows:
        # Whole batch would be one tile: split into >= 2 tiles so the
        # "parallel" grid axis has work for both v7x TensorCores.
        return max(8, _round_up(-(-n // 2), 8))
    return rows


def focal_loss(logits, targets, alpha=ALPHA, gamma=GAMMA, reduction="mean",
               max_tile_rows=None):
    """logits: (N, C) float32/bfloat16, targets: (N,) int. Returns scalar f32."""
    n, c = logits.shape
    targets2d = targets.astype(jnp.int32).reshape(n, 1)

    vmem_cap = _vmem_capacity_bytes()
    vmem_limit = min(vmem_cap * 3 // 4, 96 * 1024 * 1024)   # v7x ~48 MiB, v5e/v6e ~96 MiB
    ws_budget = vmem_limit - 2 * 1024 * 1024                # headroom: out slabs + internals

    itemsize = jnp.dtype(logits.dtype).itemsize
    tile_n = _pick_tile_rows(n, c, itemsize, ws_budget, max_tile_rows)
    num_tiles = pl.cdiv(n, tile_n)

    kernel = functools.partial(_focal_loss_kernel, n_total=n,
                               alpha=float(alpha), gamma=float(gamma))

    partials = pl.pallas_call(
        kernel,
        out_shape=jax.ShapeDtypeStruct((num_tiles * 8, 128), jnp.float32),
        grid_spec=pltpu.PrefetchScalarGridSpec(
            num_scalar_prefetch=0,
            grid=(num_tiles,),
            in_specs=[
                pl.BlockSpec((tile_n, c), lambda i: (i, 0)),
                pl.BlockSpec((tile_n, 1), lambda i: (i, 0)),
            ],
            # Distinct aligned (8,128) slab per grid step -> axis stays "parallel".
            out_specs=pl.BlockSpec((8, 128), lambda i: (i, 0)),
        ),
        compiler_params=pltpu.CompilerParams(
            dimension_semantics=("parallel",),
            vmem_limit_bytes=int(vmem_limit),
        ),
    )(logits, targets2d)

    total = jnp.sum(partials)
    if reduction == "mean":
        return total / jnp.float32(n)
    elif reduction == "sum":
        return total
    else:
        # TODO(synk): reduction='none' (per-sample loss output) not implemented.
        raise NotImplementedError("only 'mean' and 'sum' reductions supported")


def focal_loss_ref(logits, targets):
    """Pure-JAX reference matching the PyTorch module (reduction='mean')."""
    probs = jax.nn.softmax(logits.astype(jnp.float32), axis=1)
    one_hot = jax.nn.one_hot(targets, logits.shape[1], dtype=jnp.float32)
    p_t = jnp.sum(probs * one_hot, axis=1)
    loss = -ALPHA * (1.0 - p_t) ** GAMMA * jnp.log(p_t + EPS)
    return jnp.mean(loss)


if __name__ == "__main__":
    key = jax.random.PRNGKey(0)
    k_logits, k_targets = jax.random.split(key)

    N, C = 20, 16  # small (batch, num_classes); N deliberately not a multiple of 8
    logits = jax.random.normal(k_logits, (N, C), dtype=jnp.float32)
    targets = jax.random.randint(k_targets, (N,), 0, C, dtype=jnp.int32)

    ref = focal_loss_ref(logits, targets)

    # Default path: budget-sized tiles; N=20 forces the >=2-tile split
    # (tile of 16 + ragged tile of 4), exercising grid + row masking.
    out1 = jax.block_until_ready(focal_loss(logits, targets))
    assert jnp.allclose(out1, ref, rtol=1e-5, atol=1e-6), (out1, ref)

    # Force a smaller tile (3 tiles, ragged last) to exercise the pipeline.
    out2 = jax.block_until_ready(focal_loss(logits, targets, max_tile_rows=8))
    assert jnp.allclose(out2, ref, rtol=1e-5, atol=1e-6), (out2, ref)

    print("KERNEL_OK")
</pallas_src>

<mosaic_0001>
module attributes {stable_mosaic.version = 11 : i64} {
  func.func @_focal_loss_kernel(%arg0: i32, %arg1: memref<16x16xf32, #tpu.memory_space<vmem>>, %arg2: memref<16x1xi32, #tpu.memory_space<vmem>>, %arg3: memref<8x128xf32, #tpu.memory_space<vmem>>) attributes {dimension_semantics = [#tpu.dimension_semantics<parallel>], iteration_bounds = array<i64: 2>, scalar_prefetch = 0 : i64, scratch_operands = 0 : i64, tpu.core_type = #tpu.core_type<tc>, window_params = [{transform_indices = @transform_0, window_bounds = array<i64: 16, 16>}, {transform_indices = @transform_1, window_bounds = array<i64: 16, 1>}, {transform_indices = @transform_2, window_bounds = array<i64: 8, 128>}]} {
    %c0 = arith.constant 0 : index
    %c0_0 = arith.constant 0 : index
    %0 = vector.load %arg1[%c0, %c0_0] : memref<16x16xf32, #tpu.memory_space<vmem>>, vector<16x16xf32>
    %c0_1 = arith.constant 0 : index
    %c0_2 = arith.constant 0 : index
    %1 = vector.load %arg2[%c0_1, %c0_2] : memref<16x1xi32, #tpu.memory_space<vmem>>, vector<16x1xi32>
    %c16_i32 = arith.constant 16 : i32
    %2 = arith.muli %arg0, %c16_i32 : i32
    %3 = tpu.iota {dimensions = array<i32: 0>} : vector<16x1xi32>
    %4 = vector.broadcast %2 : i32 to vector<16x1xi32>
    %5 = arith.addi %4, %3 : vector<16x1xi32>
    %c20_i32 = arith.constant 20 : i32
    %6 = vector.broadcast %c20_i32 : i32 to vector<16x1xi32>
    %7 = arith.cmpi slt, %5, %6 : vector<16x1xi32>
    %cst = arith.constant dense<0xFF800000> : vector<16xf32>
    %8 = vector.multi_reduction <maximumf>, %0, %cst [1] : vector<16x16xf32> to vector<16xf32>
    %9 = vector.shape_cast %8 : vector<16xf32> to vector<16x1xf32>
    %10 = vector.broadcast %9 : vector<16x1xf32> to vector<16x16xf32>
    %11 = arith.subf %0, %10 : vector<16x16xf32>
    %12 = math.exp %11 : vector<16x16xf32>
    %cst_3 = arith.constant dense<0.000000e+00> : vector<16xf32>
    %13 = vector.multi_reduction <add>, %12, %cst_3 [1] : vector<16x16xf32> to vector<16xf32>
    %14 = vector.shape_cast %13 : vector<16xf32> to vector<16x1xf32>
    %15 = tpu.iota {dimensions = array<i32: 1>} : vector<16x16xi32>
    %16 = vector.broadcast %1 : vector<16x1xi32> to vector<16x16xi32>
    %17 = arith.cmpi eq, %15, %16 : vector<16x16xi32>
    %cst_4 = arith.constant 0.000000e+00 : f32
    %18 = vector.broadcast %cst_4 : f32 to vector<16x16xf32>
    %19 = arith.select %17, %0, %18 : vector<16x16xi1>, vector<16x16xf32>
    %cst_5 = arith.constant dense<0.000000e+00> : vector<16xf32>
    %20 = vector.multi_reduction <add>, %19, %cst_5 [1] : vector<16x16xf32> to vector<16xf32>
    %21 = vector.shape_cast %20 : vector<16xf32> to vector<16x1xf32>
    %22 = arith.subf %21, %9 : vector<16x1xf32>
    %23 = math.exp %22 : vector<16x1xf32>
    %24 = tpu.reciprocal %14 : vector<16x1xf32> -> vector<16x1xf32>
    %25 = arith.mulf %23, %24 : vector<16x1xf32>
    %cst_6 = arith.constant 1.000000e+00 : f32
    %26 = vector.broadcast %cst_6 : f32 to vector<16x1xf32>
    %27 = arith.subf %26, %25 : vector<16x1xf32>
    %28 = arith.mulf %27, %27 : vector<16x1xf32>
    %cst_7 = arith.constant -2.500000e-01 : f32
    %29 = vector.broadcast %cst_7 : f32 to vector<16x1xf32>
    %30 = arith.mulf %29, %28 : vector<16x1xf32>
    %cst_8 = arith.constant 9.99999993E-9 : f32
    %31 = vector.broadcast %cst_8 : f32 to vector<16x1xf32>
    %32 = arith.addf %25, %31 : vector<16x1xf32>
    %33 = math.log %32 : vector<16x1xf32>
    %34 = arith.mulf %30, %33 : vector<16x1xf32>
    %cst_9 = arith.constant 0.000000e+00 : f32
    %35 = vector.broadcast %cst_9 : f32 to vector<16x1xf32>
    %36 = arith.select %7, %34, %35 : vector<16x1xi1>, vector<16x1xf32>
    %37 = vector.shape_cast %36 : vector<16x1xf32> to vector<1x16x1xf32>
    %cst_10 = arith.constant dense<0.000000e+00> : vector<1xf32>
    %38 = vector.multi_reduction <add>, %37, %cst_10 [1, 2] : vector<1x16x1xf32> to vector<1xf32>
    %39 = vector.shape_cast %38 : vector<1xf32> to vector<1x1x1xf32>
    %40 = vector.extract %39[0, 0, 0] : f32 from vector<1x1x1xf32>
    %41 = tpu.iota {dimensions = array<i32: 0>} : vector<8x128xi32>
    %42 = tpu.iota {dimensions = array<i32: 1>} : vector<8x128xi32>
    %c0_i32 = arith.constant 0 : i32
    %43 = vector.broadcast %c0_i32 : i32 to vector<8x128xi32>
    %44 = arith.cmpi eq, %41, %43 : vector<8x128xi32>
    %c0_i32_11 = arith.constant 0 : i32
    %45 = vector.broadcast %c0_i32_11 : i32 to vector<8x128xi32>
    %46 = arith.cmpi eq, %42, %45 : vector<8x128xi32>
    %47 = arith.andi %44, %46 : vector<8x128xi1>
    %cst_12 = arith.constant 0.000000e+00 : f32
    %48 = vector.broadcast %40 : f32 to vector<8x128xf32>
    %49 = vector.broadcast %cst_12 : f32 to vector<8x128xf32>
    %50 = arith.select %47, %48, %49 : vector<8x128xi1>, vector<8x128xf32>
    %c0_13 = arith.constant 0 : index
    %c0_14 = arith.constant 0 : index
    %51 = vector.load %arg3[%c0_13, %c0_14] : memref<8x128xf32, #tpu.memory_space<vmem>>, vector<8x128xf32>
    tpu.vector_store %arg3[%c0_13, %c0_14], %50 {strides = array<i32>} : memref<8x128xf32, #tpu.memory_space<vmem>>, vector<8x128xf32>,
    return
  }
  func.func @transform_0(%arg0: i32) -> (i32, i32) {
    %c0_i32 = arith.constant 0 : i32
    %c0_i32_0 = arith.constant 0 : i32
    return %arg0, %c0_i32 : i32, i32
  }
  func.func @transform_1(%arg0: i32) -> (i32, i32) {
    %c0_i32 = arith.constant 0 : i32
    %c0_i32_0 = arith.constant 0 : i32
    return %arg0, %c0_i32 : i32, i32
  }
  func.func @transform_2(%arg0: i32) -> (i32, i32) {
    %c0_i32 = arith.constant 0 : i32
    %c0_i32_0 = arith.constant 0 : i32
    return %arg0, %c0_i32 : i32, i32
  }
}

</mosaic_0001>

<bundles_post_ra>
// kernel: tpu_custom_call.1
= control target key start
LH: loop header
LB: loop body
LE: loop exit
PB: predicated region body
PF: predicated region fallthrough
CT: control target
= control target key end

     0   :  { %7 = vsyncpa [#allocation3], 0  ;;  %s655_s0 = inlined_call_operand.vmem [shape: f32[20,16], index: 0, kind: input, shape index: {}]   ;;  %s656_s1 = inlined_call_operand.vmem [shape: s32[20,1], index: 1, kind: input, shape index: {}]   ;;  %s657_s2 = inlined_call_operand.hbm [shape: f32[16,128], index: 2, kind: output, shape index: {}]  }
   0x1   :  { %9 = vsyncpa [#allocation3 + $0x1], 0  ;;  %s541_s9 = smov 0   ;;  %s543_s10 = smov 0  }
   0x2   :  { %s545_s11 = smov 0   ;;  %s547_s12 = smov 0  }
   0x3 LB: > { %s562_s13 = sadd.s32 4294967295, %s522_s12   ;;  %s386_s14 = sadd.s32 4294967294, %s522_s12   ;;  %s522_s12 = sphi %s547_s12, %s663_s12   ;;  %s518_s11 = sphi %s545_s11, %s662_s11   ;;  %s514_s10 = sphi %s543_s10, %s661_s10   ;;  %s510_s9 = sphi %s541_s9, %s660_s9  }
   0x4   : > { %s566_s15 = sadd.s32 1, %s522_s12   ;;  %s74_s16 = sadd.s32 1, %s518_s11 }
   0x5   : > { %s71_s17 = ssub.s32 %s522_s12, %s566_s15  ;;  %p84_p0 = scmp.ne.s32.totalorder %s518_s11, %s514_s10 }
   0x6   : > { %p72_p1 = scmp.eq.s32.totalorder %s71_s17, 0  ;;  %p85_p2 = scmp.eq.s32.totalorder %s562_s13, 1 }
   0x7   : > { %p90_p3 = scmp.ne.s32.totalorder %s514_s10, %s510_s9  ;;  %p91_p4 = scmp.eq.s32.totalorder %s386_s14, 1 }
   0x8   : > { %s577_s18 = scalar_select %p72_p1, %s518_s11, %s74_s16  }
   0x9   : > { %p579_p5 = por %p85_p2, %p84_p0  ;;  %p583_p6 = por %p91_p4, %p90_p3 }
   0xa   : > { %p389_p7 = scmp.ge.s32.totalorder %s522_s12, 1  ;;  %p143_p8 = scmp.lt.s32.totalorder %s522_s12, 3 }
   0xc   : > { %p144_p9 = pnand %p389_p7, %p143_p8 }
   0xd   : > { %s391_s21 = sshll.u32 (!%p144_p9), %s562_s13, 1  ;;  %v524_v0 = vmov (!%p144_p9), 0   ;;  %vm219_vm0 = vcmask (!%p144_p9), 130048   ;;  %v211_v7 = vlaneseq (!%p144_p9)  ;;  %s395_s29 = sshll.u32 (!%p144_p9), %s562_s13, 4  ;;  %vm282_vm5 = vcmask (!%p144_p9), 7168  }
   0xe   : > { %147 = sbr.rel (%p144_p9) target bundleno = 585 (0x249), region = 28  ;;  %442 = vset.pattern.permute.xlu1 (!%p144_p9), %v524_v0  ;;  %p183_p10 = scmp.lt.s32.totalorder (!%p144_p9), %s391_s21, 2  ;;  %443 = vset.pattern.permute.xlu0 (!%p144_p9), %v524_v0  ;;  %v214_v43 = vstv (!%p144_p9), %s395_s29 }
   0xf   : > { %v598_v8 = vand.u32 (!%p144_p9), 127, %v211_v7  ;;  %v212_v42 = vshrl.u32 (!%p144_p9), %v211_v7, 7  ;;  %s175_s30 = sand.u32 (!%p144_p9), 1, %s514_s10   ;;  %s397_s4 = sshll.u32 (!%p144_p9), %s562_s13, 7 }
  0x10   : > { %s390_s3 = sshll.u32 (!%p144_p9), %s175_s30, 3  ;;  %s613_s16 = scalar_lea.hbm (!%p144_p9), %s657_s2, %s397_s4 }
  0x11   : > { %v213_v46 = vadd.s32 (!%p144_p9), 8, %v212_v42  ;;  %v215_v48 = vadd.s32 (!%p144_p9), %v214_v43, %v212_v42  ;;  %vm295_vm6 = vcmp.eq.s32.totalorder (!%p144_p9), %v212_v42, 0  ;;  %vm296_vm7 = vcmp.eq.s32.totalorder (!%p144_p9), %v598_v8, 0  ;;  %s177_s5 = scalar_lea.vmem (!%p144_p9), [#allocation2], %s390_s3  ;;  %s302_s17 = scalar_lea.sflag (!%p144_p9), [#allocation3], %s175_s30 }
  0x12   : > { %s315_s6 = sshll.u32 (!%p144_p9), %s177_s5, 4  ;;  %vm297_vm8 = vmand (!%p144_p9), %vm295_vm6, %vm296_vm7  ;;  %s525_s13 = smov (!%p144_p9), [#allocation2]   ;;  %s615_s6 = int_to_ptr.vmem [resolvable:$true] %s315_s6 }
  0x13   : > { %v216_v52 = vadd.s32 (!%p144_p9), %v214_v43, %v213_v46  ;;  %vm217_vm3 = vcmp.lt.s32.totalorder (!%p144_p9), %v215_v48, 20 }
  0x15   : > { %s665_s21 = smov (!%p183_p10, %s391_s21), 2  ;;  %vm218_vm4 = vcmp.lt.s32.totalorder %v216_v52, 20 }
  0x16   : > { %s392_s22 = sshll.u32 %s665_s21, 3  ;;  %s460_s21 = scalar_lea.vmem %s615_s6, 128 }
  0x17   : > { %s200_s25 = scalar_lea.vmem %s656_s1, %s392_s22  ;;  %s186_s28 = scalar_lea.vmem %s655_s0, %s392_s22 }
  0x18   : > { %v208_v1 = vld [vmem:[%s200_s25] sm:$0xff]  ;;  %v207_v4 = vld [vmem:[%s186_s28 + $0x8] sm:$0xff]  ;;  %p461_p11 = scmp.ne.s32.totalorder %s615_s6, %s460_s21  ;;  %s464_s22 = sshll.u32 %s525_s13, 4  ;;  %s465_s22 = int_to_ptr.vmem [resolvable:$false] %s464_s22 }
  0x19   : > { %v206_v2 = vld [vmem:[%s186_s28] sm:$0xff]  ;;  %241 = vperm.xlu1 %442, %v208_v1   ;;  %v209_v5 = vld [vmem:[%s200_s25 + $0x8] sm:$0xff]  ;;  %v223_v6 = vsel %vm219_vm0, %v207_v4, -inf  ;;  %s466_s23 = scalar_lea.vmem %s465_s22, 256  ;;  %p467_p0 = scmp.lt.s32.totalorder %s615_s6, %s465_s22 }
  0x1a   : > { %v220_v3 = vsel %vm219_vm0, %v206_v2, -inf  ;;  %p462_p12 = pnand %p461_p11, %p579_p5  ;;  %p468_p1 = scmp.lt.s32.totalorder %s466_s23, %s460_s21 }
  0x1b   : > { %221 = vmax.xlane.f32.xlu0 %v220_v3 }
  0x1c   : > { %p463_p13 = pneg %p462_p12  ;;  %p469_p2 = por %p468_p1, %p467_p0 }
  0x1d   : > { %244 = vperm.xlu1 %442, %v209_v5  }
  0x1e   : > { %p470_p3 = pnand %p469_p2, %p463_p13 }
  0x1f   : > { %224 = vmax.xlane.f32.xlu0 %v223_v6 }
  0x98   : > { %v242_v9 = vpop.permute.xlu1 %241 }
  0x99   : > { %vm246_vm1 = vcmp.eq.s32.totalorder %v598_v8, %v242_v9 }
  0x9a   : > { %v248_v10 = vsel %vm246_vm1, %v206_v2, 0.0 }
  0x9b   : > { %v250_v11 = vsel %vm219_vm0, %v248_v10, 0.0 }
  0x9c   : > { %v245_v12 = vpop.permute.xlu1 %244  ;;  %251 = vadd.xlane.f32.xlu0 %v250_v11 }
  0x9d   : > { %vm247_vm2 = vcmp.eq.s32.totalorder %v598_v8, %v245_v12 }
  0x9e   : > { %v249_v13 = vsel %vm247_vm2, %v207_v4, 0.0 }
  0x9f   : > { %v253_v14 = vsel %vm219_vm0, %v249_v13, 0.0 }
  0xa0   : > { %254 = vadd.xlane.f32.xlu1 %v253_v14 }
  0xa8   : > { %v222_v15 = vpop.xlane.xlu0 %221 }
  0xa9   : > { %v226_v16 = vsub.f32 %v206_v2, %v222_v15 }
  0xab   : > { %v228_v17 = vmul.f32 1.442695, %v226_v16 }
  0xac   : > { %v225_v18 = vpop.xlane.xlu0 %224 }
  0xad   : > { %444 = vpow2.f32 %v228_v17  ;;  %v227_v19 = vsub.f32 %v207_v4, %v225_v18 }
  0xaf   : > { %v230_v20 = vmul.f32 1.442695, %v227_v19 }
  0xb1   : > { %446 = vpow2.f32 %v230_v20 }
  0xb7   : > { %v445_v21 = vpop.eup %444 }
  0xb8   : > { %v232_v22 = vsel %vm219_vm0, %v445_v21, 0.0 }
  0xb9   : > { %233 = vadd.xlane.f32.xlu0 %v232_v22 }
  0xbb   : > { %v447_v23 = vpop.eup %446 }
  0xbc   : > { %v235_v24 = vsel %vm219_vm0, %v447_v23, 0.0 }
  0xbd   : > { %236 = vadd.xlane.f32.xlu0 %v235_v24 }
 0x129   : > { %v252_v25 = vpop.xlane.xlu0 %251 }
 0x12a   : > { %v256_v26 = vsub.f32 %v252_v25, %v222_v15 }
 0x12c   : > { %v258_v28 = vmul.f32 1.442695, %v256_v26 }
 0x12d   : > { %v255_v27 = vpop.xlane.xlu1 %254 }
 0x12e   : > { %v257_v29 = vsub.f32 %v255_v27, %v225_v18  ;;  %448 = vpow2.f32 %v258_v28 }
 0x130   : > { %v260_v30 = vmul.f32 1.442695, %v257_v29 }
 0x138   : > { %v449_v33 = vpop.eup %448 }
 0x146   : > { %v234_v31 = vpop.xlane.xlu0 %233 }
 0x147   : > { %450 = vrcp.f32 %v234_v31 }
 0x148   : > { %452 = vpow2.f32 %v260_v30 }
 0x14a   : > { %v237_v32 = vpop.xlane.xlu0 %236 }
 0x14b   : > { %454 = vrcp.f32 %v237_v32 }
 0x151   : > { %v451_v34 = vpop.eup %450 }
 0x152   : > { %v264_v35 = vmul.f32 %v451_v34, %v449_v33  ;;  %v453_v36 = vpop.eup %452 }
 0x154   : > { %v272_v37 = vadd.f32 1e-08, %v264_v35  ;;  %v266_v41 = vsub.f32 1.0, %v264_v35 }
 0x155   : > { %v455_v38 = vpop.eup %454 }
 0x156   : > { %v265_v39 = vmul.f32 %v455_v38, %v453_v36  ;;  %456 = vlog2.f32 %v272_v37  ;;  %v268_v45 = vmul.f32 %v266_v41, %v266_v41 }
 0x158   : > { %v273_v40 = vadd.f32 1e-08, %v265_v39  ;;  %v267_v44 = vsub.f32 1.0, %v265_v39  ;;  %v270_v50 = vmul.f32 -0.25, %v268_v45 }
 0x15a   : > { %458 = vlog2.f32 %v273_v40  ;;  %v269_v49 = vmul.f32 %v267_v44, %v267_v44 }
 0x15c   : > { %v271_v55 = vmul.f32 -0.25, %v269_v49 }
 0x160   : > { %v457_v47 = vpop.eup %456 }
 0x161   : > { %v275_v51 = vmul.f32 0.6931472, %v457_v47 }
 0x163   : > { %v278_v53 = vmul.f32 %v275_v51, %v270_v50 }
 0x164   : > { %v459_v54 = vpop.eup %458 }
 0x165   : > { %v277_v56 = vmul.f32 0.6931472, %v459_v54  ;;  %v280_v58 = vsel %vm217_vm3, %v278_v53, 0.0 }
 0x166   : > { %v283_v60 = vsel %vm282_vm5, %v280_v58, 0.0 }
 0x167   : > { %v279_v57 = vmul.f32 %v277_v56, %v271_v55 }
 0x169   : > { %v281_v59 = vsel %vm218_vm4, %v279_v57, 0.0 }
 0x16a   : > { %v284_v61 = vsel %vm282_vm5, %v281_v59, 0.0 }
 0x16b   : > { %v285_v62 = vadd.f32 %v284_v61, %v283_v60 }
 0x16d   : > { %286 = vadd.xlane.f32.xlu0 %v285_v62 }
 0x1fa   : > { %v287_v63 = vpop.xlane.xlu0 %286 }
 0x1fb   : > { %v288_v0 = vrot.slane %v287_v63, 4 }
 0x1fd   : > { %v289_v1 = vadd.f32 %v288_v0, %v287_v63 }
 0x1ff   : > { %v290_v2 = vrot.slane %v289_v1, 2 }
 0x201   : > { %v291_v3 = vadd.f32 %v290_v2, %v289_v1 }
 0x203   : > { %v292_v4 = vrot.slane %v291_v3, 1 }
 0x205   : > { %v293_v5 = vadd.f32 %v292_v4, %v291_v3 }
 0x207   : > { %400 = vpush %v293_v5 }
 0x238   : > { %s401_s7 = spop %400 }
 0x239   : > { %v298_v6 = vstv %s401_s7 }
 0x23a   : > { %v299_v7 = vsel %vm297_vm8, %v298_v6, 0.0 }
 0x23b   : > { %300 = vst [vmem:[%s177_s5] sm:$0xff] %v299_v7 }
 0x23c   : > { %473 = shalt.err (!%p470_p3)
}
 0x23d   : > { %s474_s24 = scalar_lea.hbm %s613_s16, 128  ;;  %s478_s27 = scalar_lea.hbm %s657_s2, 256 }
 0x23e   : > { %p475_p4 = scmp.ne.s32.totalorder %s613_s16, %s474_s24  ;;  %p479_p9 = scmp.lt.u32.totalorder %s613_s16, %s657_s2 }
 0x23f   : > { %p480_p10 = scmp.lt.u32.totalorder %s478_s27, %s474_s24  ;;  %p482_p12 = scmp.lt.u32.totalorder %s474_s24, %s613_s16 }
 0x240   : > { %p476_p7 = pnand %p475_p4, %p579_p5 }
 0x241   : > { %p481_p11 = por %p480_p10, %p479_p9 }
 0x242   : > { %p477_p8 = pneg %p476_p7 }
 0x243   : > { %p483_p13 = por %p482_p12, %p481_p11 }
 0x245   : > { %p484_p0 = pnand %p483_p13, %p477_p8 }
 0x247   : > { %487 = shalt.err (!%p484_p0)
}
 0x248   : > { %402 = dma.vmem_to_hbm [thread:$0]  (%p579_p5), %s615_s6, 128, %s613_s16, %s302_s17  }
 0x249 PF: > { %p408_p1 = scmp.ge.s32.totalorder %s522_s12, 2  ;;  %s327_s30 = sand.u32 1, %s510_s9  }
 0x24a   : > { %s328_s3 = scalar_lea.sflag [#allocation3], %s327_s30 }
 0x24b   : > { %p405_p2 = pnand %p408_p1, %p583_p6 }
 0x24d   : > { %505 = dma.done.wait (!%p405_p2), %s328_s3, 128  }
 0x24e   : > { %507 = vsyncadd (!%p405_p2), %s328_s3, 4294967168  ;;  %p12_p3 = scmp.ge.s32.totalorder %s566_s15, 4   ;;  %s660_s9 = smov %s514_s10 }
 0x24f   : > { %s661_s10 = smov %s518_s11  ;;  %s662_s11 = smov %s577_s18 }
 0x250   : > { %s663_s12 = smov %s566_s15  ;;  %14 = sbr.rel (!%p12_p3) target bundleno = 3 (0x3), region = 66 }
 0x257   :  { %333 = vsyncpa [#allocation3], 1 }
 0x258   :  { %335 = vsyncpa [#allocation3 + $0x1], 1 }

</bundles_post_ra>
